<compile_context>
chip_gen: v7x
topology: tpu7x:2x2x1
jax: 0.10.0
libtpu: 0.0.40
codegen_flags: <defaults>
</compile_context>

<pallas_src>
import functools

import jax
import jax.numpy as jnp
from jax.experimental import pallas as pl
from jax.experimental.pallas import tpu as pltpu

ESP = 1e-8                 # matches `esp` in the PyTorch module
LANES = 128
SUBLANES = 8
MIN_GRID_BLOCKS = 8        # so ("parallel",) shards across v7x's 2 TensorCores
ABS_MAX_BLOCK_ROWS = 8192  # 8192 x 128 f32 = 4 MiB per input per pipeline buffer


def _round_up(x, m):
    return ((x + m - 1) // m) * m


def _vmem_capacity_bytes():
    """Trace-time VMEM capacity query; conservative v7x fallback."""
    try:
        cap = getattr(pltpu.get_tpu_info(), "vmem_capacity_bytes", None)
        if cap:
            return int(cap)
    except Exception:
        pass
    return 64 << 20


def _fidelity_kernel(p_ref, g_ref, o_ref, *, block_rows, rows_valid_last):
    """Per-block partial sum of  sqrt(p*g+eps) + sqrt((1-p)*(1-g)+eps).

    p_ref / g_ref : (block_rows, LANES) input tiles (cast to f32 in-kernel).
    o_ref         : (1, SUBLANES, LANES) lane-parallel partial sum.
    """
    p = p_ref[...].astype(jnp.float32)
    g = g_ref[...].astype(jnp.float32)
    fid = jnp.sqrt(p * g + ESP) + jnp.sqrt((1.0 - p) * (1.0 - g) + ESP)

    def _reduce(x):
        # (block_rows, 128) -> (8, 128): layout-preserving split of the sublane
        # axis followed by elementwise vreg adds (VPU only, no XLU per step).
        return x.reshape(block_rows // SUBLANES, SUBLANES, LANES).sum(axis=0)

    if rows_valid_last == block_rows:
        # Grid divides the rows evenly: hot path, zero masking work anywhere.
        o_ref[0] = _reduce(fid)
    else:
        # Only the final grid block carries out-of-bounds (garbage) rows; drop
        # them with a select (never fid*mask, so NaN garbage cannot leak).
        is_last = pl.program_id(0) == pl.num_programs(0) - 1

        @pl.when(jnp.logical_not(is_last))
        def _():
            o_ref[0] = _reduce(fid)

        @pl.when(is_last)
        def _():
            row_ids = jax.lax.broadcasted_iota(jnp.int32, (block_rows, LANES), 0)
            o_ref[0] = _reduce(jnp.where(row_ids < rows_valid_last, fid, 0.0))


def _fidelity_partial_sum(p2, g2, *, vmem_limit_bytes, max_block_rows):
    """Sum of the fidelity terms over a lane-dense (rows, 128) slab, rows >= 8."""
    rows = p2.shape[0]
    # Biggest block that (a) keeps the two-input double-buffers comfortably
    # inside the scoped-VMEM limit and (b) still yields >= MIN_GRID_BLOCKS
    # grid steps so the parallel grid axis uses both v7x TensorCores.
    block_rows = min(max_block_rows,
                     _round_up(pl.cdiv(rows, MIN_GRID_BLOCKS), SUBLANES))
    n_blocks = pl.cdiv(rows, block_rows)
    rows_valid_last = rows - (n_blocks - 1) * block_rows

    kernel = functools.partial(_fidelity_kernel, block_rows=block_rows,
                               rows_valid_last=rows_valid_last)

    partials = pl.pallas_call(
        kernel,
        out_shape=jax.ShapeDtypeStruct((n_blocks, SUBLANES, LANES), jnp.float32),
        grid_spec=pltpu.PrefetchScalarGridSpec(
            num_scalar_prefetch=0,
            grid=(n_blocks,),
            in_specs=[
                pl.BlockSpec((block_rows, LANES), lambda i: (i, 0)),
                pl.BlockSpec((block_rows, LANES), lambda i: (i, 0)),
            ],
            out_specs=pl.BlockSpec((1, SUBLANES, LANES), lambda i: (i, 0, 0)),
        ),
        compiler_params=pltpu.CompilerParams(
            dimension_semantics=("parallel",),
            vmem_limit_bytes=vmem_limit_bytes),
    )(p2, g2)

    # Tiny final reduction over n_blocks * 1024 f32 values.
    return jnp.sum(partials)


def fidelity_loss(p, g):
    """Pallas equivalent of Fidelity_Loss()(p, g). Returns a scalar f32."""
    p_flat = jnp.reshape(p, (-1,))
    g_flat = jnp.reshape(g, (-1,))
    n_total = p_flat.shape[0]
    assert g_flat.shape[0] == n_total
    if n_total == 0:
        return jnp.float32(jnp.nan)  # torch.mean of an empty tensor is nan

    # Generation-aware sizing: 4 MiB / input / pipeline buffer caps the input
    # double-buffers at 16 MiB; the explicit ~48 MiB scoped limit fits v7x's
    # 64 MiB VMEM, clears v5e's 16 MiB default, and leaves headroom for the
    # f32 elementwise temporaries at full block size.
    vmem_limit = min(_vmem_capacity_bytes() * 3 // 4, 48 << 20)
    rows_budget = (vmem_limit // 3) // (2 * 2 * LANES * 4)  # 2 inputs x 2 bufs x f32
    max_block_rows = max(SUBLANES,
                         min(ABS_MAX_BLOCK_ROWS,
                             (rows_budget // SUBLANES) * SUBLANES))

    # Zero-copy kernel body: the largest 128-aligned prefix (reshape of the
    # contiguous flat array is free).  The <128-element remainder, and inputs
    # too small to fill an (8,128) tile, are summed directly in the wrapper.
    n_aligned = (n_total // LANES) * LANES
    if n_aligned < SUBLANES * LANES:
        n_aligned = 0

    total = jnp.float32(0.0)
    if n_aligned:
        if n_aligned == n_total:
            body_p, body_g = p_flat, g_flat
        else:
            # TODO(synk): for huge 128-unaligned inputs this prefix slice may
            # still materialise one extra HBM copy; fully zero-copy handling
            # would need memory_space=pl.ANY + manual DMA of the ragged tail.
            body_p = p_flat[:n_aligned]
            body_g = g_flat[:n_aligned]
        total = total + _fidelity_partial_sum(
            body_p.reshape(-1, LANES), body_g.reshape(-1, LANES),
            vmem_limit_bytes=vmem_limit, max_block_rows=max_block_rows)

    if n_aligned < n_total:
        pt = p_flat[n_aligned:].astype(jnp.float32)
        gt = g_flat[n_aligned:].astype(jnp.float32)
        total = total + jnp.sum(jnp.sqrt(pt * gt + ESP)
                                + jnp.sqrt((1.0 - pt) * (1.0 - gt) + ESP))

    # `1 -` and the mean normalisation folded out of the kernel.
    return 1.0 - total / jnp.float32(n_total)


def _reference(p, g):
    p = jnp.reshape(p, (-1,)).astype(jnp.float32)
    g = jnp.reshape(g, (-1,)).astype(jnp.float32)
    loss = 1.0 - (jnp.sqrt(p * g + ESP) + jnp.sqrt((1.0 - p) * (1.0 - g) + ESP))
    return jnp.mean(loss)


if __name__ == "__main__":
    key = jax.random.PRNGKey(0)

    # Main case: NCHW-like probabilities / soft labels in [0, 1].
    kp, kg = jax.random.split(key)
    p = jax.random.uniform(kp, (2, 4, 16, 16), dtype=jnp.float32)
    g = jax.random.uniform(kg, (2, 4, 16, 16), dtype=jnp.float32)
    out = jax.block_until_ready(fidelity_loss(p, g))
    ref = jax.block_until_ready(_reference(p, g))
    assert jnp.allclose(out, ref, atol=1e-5, rtol=1e-5), (out, ref)

    # Ragged case: exercises the masked last grid block + wrapper-side tail.
    kp2, kg2 = jax.random.split(kg)
    p2 = jax.random.uniform(kp2, (10, 131), dtype=jnp.float32)
    g2 = jax.random.uniform(kg2, (10, 131), dtype=jnp.float32)
    out2 = jax.block_until_ready(fidelity_loss(p2, g2))
    ref2 = jax.block_until_ready(_reference(p2, g2))
    assert jnp.allclose(out2, ref2, atol=1e-5, rtol=1e-5), (out2, ref2)

    print("KERNEL_OK")
</pallas_src>

<mosaic_0001>
module attributes {stable_mosaic.version = 11 : i64} {
  func.func @_fidelity_kernel(%arg0: i32, %arg1: memref<8x128xf32, #tpu.memory_space<vmem>>, %arg2: memref<8x128xf32, #tpu.memory_space<vmem>>, %arg3: memref<1x8x128xf32, #tpu.memory_space<vmem>>) attributes {dimension_semantics = [#tpu.dimension_semantics<parallel>], iteration_bounds = array<i64: 2>, scalar_prefetch = 0 : i64, scratch_operands = 0 : i64, tpu.core_type = #tpu.core_type<tc>, window_params = [{transform_indices = @transform_0, window_bounds = array<i64: 8, 128>}, {transform_indices = @transform_1, window_bounds = array<i64: 8, 128>}, {transform_indices = @transform_2, window_bounds = array<i64: 1, 8, 128>}]} {
    %c0 = arith.constant 0 : index
    %c0_0 = arith.constant 0 : index
    %0 = vector.load %arg1[%c0, %c0_0] : memref<8x128xf32, #tpu.memory_space<vmem>>, vector<8x128xf32>
    %c0_1 = arith.constant 0 : index
    %c0_2 = arith.constant 0 : index
    %1 = vector.load %arg2[%c0_1, %c0_2] : memref<8x128xf32, #tpu.memory_space<vmem>>, vector<8x128xf32>
    %2 = arith.mulf %0, %1 : vector<8x128xf32>
    %cst = arith.constant 9.99999993E-9 : f32
    %3 = vector.broadcast %cst : f32 to vector<8x128xf32>
    %4 = arith.addf %2, %3 : vector<8x128xf32>
    %5 = math.sqrt %4 : vector<8x128xf32>
    %cst_3 = arith.constant 1.000000e+00 : f32
    %6 = vector.broadcast %cst_3 : f32 to vector<8x128xf32>
    %7 = arith.subf %6, %0 : vector<8x128xf32>
    %cst_4 = arith.constant 1.000000e+00 : f32
    %8 = vector.broadcast %cst_4 : f32 to vector<8x128xf32>
    %9 = arith.subf %8, %1 : vector<8x128xf32>
    %10 = arith.mulf %7, %9 : vector<8x128xf32>
    %cst_5 = arith.constant 9.99999993E-9 : f32
    %11 = vector.broadcast %cst_5 : f32 to vector<8x128xf32>
    %12 = arith.addf %10, %11 : vector<8x128xf32>
    %13 = math.sqrt %12 : vector<8x128xf32>
    %14 = arith.addf %5, %13 : vector<8x128xf32>
    %15 = vector.shape_cast %14 : vector<8x128xf32> to vector<1x8x128xf32>
    %cst_6 = arith.constant dense<0.000000e+00> : vector<8x128xf32>
    %16 = vector.multi_reduction <add>, %15, %cst_6 [0] : vector<1x8x128xf32> to vector<8x128xf32>
    %c0_7 = arith.constant 0 : index
    %c0_8 = arith.constant 0 : index
    %c0_9 = arith.constant 0 : index
    %17 = vector.load %arg3[%c0_7, %c0_8, %c0_9] : memref<1x8x128xf32, #tpu.memory_space<vmem>>, vector<1x8x128xf32>
    %18 = vector.shape_cast %17 : vector<1x8x128xf32> to vector<8x128xf32>
    %19 = vector.shape_cast %16 : vector<8x128xf32> to vector<1x8x128xf32>
    tpu.vector_store %arg3[%c0_7, %c0_8, %c0_9], %19 {strides = array<i32>} : memref<1x8x128xf32, #tpu.memory_space<vmem>>, vector<1x8x128xf32>,
    return
  }
  func.func @transform_0(%arg0: i32) -> (i32, i32) {
    %c0_i32 = arith.constant 0 : i32
    %c0_i32_0 = arith.constant 0 : i32
    return %arg0, %c0_i32 : i32, i32
  }
  func.func @transform_1(%arg0: i32) -> (i32, i32) {
    %c0_i32 = arith.constant 0 : i32
    %c0_i32_0 = arith.constant 0 : i32
    return %arg0, %c0_i32 : i32, i32
  }
  func.func @transform_2(%arg0: i32) -> (i32, i32, i32) {
    %c0_i32 = arith.constant 0 : i32
    %c0_i32_0 = arith.constant 0 : i32
    %c0_i32_1 = arith.constant 0 : i32
    return %arg0, %c0_i32, %c0_i32_0 : i32, i32, i32
  }
}

</mosaic_0001>

<bundles_post_ra>
// kernel: tpu_custom_call.1
= control target key start
LH: loop header
LB: loop body
LE: loop exit
PB: predicated region body
PF: predicated region fallthrough
CT: control target
= control target key end

     0   :  { %7 = vsyncpa [#allocation3], 0  ;;  %s762_s0 = inlined_call_operand.hbm [shape: f32[16,128], index: 0, kind: input, shape index: {}]   ;;  %s763_s1 = inlined_call_operand.hbm [shape: f32[16,128], index: 1, kind: input, shape index: {}]   ;;  %s764_s2 = inlined_call_operand.hbm [shape: f32[2,8,128], index: 2, kind: output, shape index: {}]  }
   0x1   :  { %9 = vsyncpa [#allocation3 + $0x1], 0 }
   0x2   :  { %10 = vsyncpa [#allocation6], 0 }
   0x3   :  { %12 = vsyncpa [#allocation6 + $0x1], 0 }
   0x4   :  { %13 = vsyncpa [#allocation4], 0 }
   0x5   :  { %15 = vsyncpa [#allocation4 + $0x1], 0  ;;  %s548_s9 = smov 0   ;;  %s550_s10 = smov 0  }
   0x6   :  { %s552_s11 = smov 0   ;;  %s554_s12 = smov 0  }
   0x7 LB: > { %s569_s13 = sadd.s32 4294967295, %s528_s12   ;;  %s328_s14 = sadd.s32 4294967294, %s528_s12   ;;  %s528_s12 = sphi %s554_s12, %s783_s12   ;;  %s524_s11 = sphi %s552_s11, %s782_s11   ;;  %s520_s10 = sphi %s550_s10, %s781_s10   ;;  %s516_s9 = sphi %s548_s9, %s780_s9  }
   0x8   : > { %s573_s15 = sadd.s32 1, %s528_s12   ;;  %s28_s16 = sadd.s32 1, %s524_s11 }
   0x9   : > { %s25_s17 = ssub.s32 %s528_s12, %s573_s15  ;;  %p35_p0 = scmp.ne.s32.totalorder %s524_s11, %s520_s10 }
   0xa   : > { %p26_p1 = scmp.eq.s32.totalorder %s25_s17, 0  ;;  %p36_p2 = scmp.eq.s32.totalorder %s528_s12, 0 }
   0xb   : > { %p41_p3 = scmp.ne.s32.totalorder %s520_s10, %s516_s9  ;;  %p42_p4 = scmp.eq.s32.totalorder %s569_s13, 0 }
   0xc   : > { %s585_s18 = scalar_select %p26_p1, %s524_s11, %s28_s16  }
   0xd   : > { %p587_p5 = por %p36_p2, %p35_p0  ;;  %p591_p6 = por %p42_p4, %p41_p3 }
   0xe   : > { %p91_p7 = scmp.eq.s32.totalorder %s569_s13, 1  ;;  %p97_p8 = scmp.eq.s32.totalorder %s328_s14, 1 }
   0xf   : > { %s768_s20 = scalar_select %p591_p6, 1, 0 }
  0x10   : > { %p360_p10 = scmp.lt.s32.totalorder %s528_s12, 2  ;;  %p598_p11 = por %p91_p7, %p35_p0 }
  0x11   : > { %p602_p12 = por %p97_p8, %p41_p3  ;;  %s607_s23 = sand.u32 1, %s524_s11  }
  0x12   : > { %s769_s21 = scalar_select %p598_p11, 1, 0 }
  0x13   : > { %s770_s22 = scalar_select %p602_p12, 1, 0 }
  0x14   : > { %s332_s24 = sshll.u32 %s528_s12, 7  ;;  %s331_s25 = sshll.u32 %s607_s23, 3 }
  0x15   : > { %s616_s28 = scalar_lea.hbm %s762_s0, %s332_s24  ;;  %s121_s29 = scalar_lea.vmem [#allocation2], %s331_s25 }
  0x16   : > { %s128_s30 = sshll.u32 %s121_s29, 4  ;;  %p622_p13 = pnand %p360_p10, %p587_p5  ;;  %s626_s30 = int_to_ptr.vmem [resolvable:$true] %s128_s30 }
  0x17   : > { %s118_s4 = scalar_lea.sflag [#allocation3], %s607_s23  ;;  %s398_s5 = scalar_lea.hbm %s616_s28, 128 }
  0x18   : > { %p399_p2 = scmp.ne.s32.totalorder %s616_s28, %s398_s5  ;;  %p400_p3 = pneg %p622_p13 }
  0x19   : > { %s403_s8 = scalar_lea.hbm %s762_s0, 256  ;;  %p404_p5 = scmp.lt.u32.totalorder %s616_s28, %s762_s0 }
  0x1a   : > { %p401_p4 = pnand %p400_p3, %p399_p2  ;;  %p405_p8 = scmp.lt.u32.totalorder %s403_s8, %s398_s5 }
  0x1b   : > { %p407_p9 = scmp.lt.u32.totalorder %s398_s5, %s616_s28 }
  0x1c   : > { %p402_p7 = pneg %p401_p4  ;;  %p406_p10 = por %p405_p8, %p404_p5 }
  0x1e   : > { %p408_p0 = por %p407_p9, %p406_p10 }
  0x20   : > { %p409_p1 = pnand %p408_p0, %p402_p7 }
  0x22   : > { %412 = shalt.err (!%p409_p1)
}
  0x23   : > { %s413_s17 = scalar_lea.vmem %s626_s30, 128  ;;  %s530_s19 = smov [#allocation2]  }
  0x24   : > { %p414_p2 = scmp.ne.s32.totalorder %s626_s30, %s413_s17  ;;  %s418_s26 = sshll.u32 %s530_s19, 4  ;;  %s419_s26 = int_to_ptr.vmem [resolvable:$false] %s418_s26 }
  0x25   : > { %s420_s27 = scalar_lea.vmem %s419_s26, 256  ;;  %p421_p11 = scmp.lt.s32.totalorder %s626_s30, %s419_s26 }
  0x26   : > { %p416_p4 = pnand %p414_p2, %p400_p3  ;;  %p422_p5 = scmp.lt.s32.totalorder %s420_s27, %s413_s17 }
  0x28   : > { %p417_p12 = pneg %p416_p4  ;;  %p423_p8 = por %p422_p5, %p421_p11 }
  0x2a   : > { %p424_p9 = pnand %p423_p8, %p417_p12 }
  0x2c   : > { %427 = shalt.err (!%p424_p9)
}
  0x2d   : > { %352 = dma.hbm_to_vmem [thread:$0]  (!%p622_p13), %s616_s28, 128, %s626_s30, %s118_s4  }
  0x2e   : > { %p772_p0 = scmp.lt.s32.totalorder %s528_s12, 3  ;;  %p773_p1 = scmp.ge.s32.totalorder %s528_s12, 1 }
  0x2f   : > { %s669_s7 = scalar_lea.hbm %s763_s1, %s332_s24  ;;  %s139_s8 = scalar_lea.vmem [#allocation5], %s331_s25 }
  0x30   : > { %p660_p7 = pnand %p773_p1, %p772_p0  ;;  %s146_s14 = sshll.u32 %s139_s8, 4  ;;  %s147_s14 = int_to_ptr.vmem [resolvable:$true] %s146_s14 }
  0x31   : > { %s136_s28 = scalar_lea.sflag [#allocation6], %s607_s23  ;;  %s428_s30 = scalar_lea.hbm %s669_s7, 128 }
  0x32   : > { %s774_s29 = scalar_select %p660_p7, 1, 0 }
  0x33   : > { %p429_p11 = scmp.ne.s32.totalorder %s669_s7, %s428_s30  ;;  %s433_s24 = scalar_lea.hbm %s763_s1, 256 }
  0x34   : > { %p434_p2 = scmp.lt.u32.totalorder %s669_s7, %s763_s1  ;;  %p435_p4 = scmp.lt.u32.totalorder %s433_s24, %s428_s30 }
  0x35   : > { %p431_p12 = pnand %p429_p11, %p400_p3  ;;  %p437_p8 = scmp.lt.u32.totalorder %s428_s30, %s669_s7 }
  0x36   : > { %p436_p5 = por %p435_p4, %p434_p2 }
  0x37   : > { %p432_p10 = pneg %p431_p12 }
  0x38   : > { %p438_p9 = por %p437_p8, %p436_p5 }
  0x3a   : > { %p439_p0 = pnand %p438_p9, %p432_p10 }
  0x3c   : > { %442 = shalt.err (!%p439_p0)
}
  0x3d   : > { %s443_s23 = scalar_lea.vmem %s147_s14, 128  ;;  %s531_s25 = smov [#allocation5]  }
  0x3e   : > { %p444_p1 = scmp.ne.s32.totalorder %s147_s14, %s443_s23  ;;  %s448_s26 = sshll.u32 %s531_s25, 4  ;;  %s449_s26 = int_to_ptr.vmem [resolvable:$false] %s448_s26 }
  0x3f   : > { %s450_s27 = scalar_lea.vmem %s449_s26, 256  ;;  %p451_p6 = scmp.lt.s32.totalorder %s147_s14, %s449_s26 }
  0x40   : > { %p446_p11 = pnand %p444_p1, %p400_p3  ;;  %p452_p7 = scmp.lt.s32.totalorder %s450_s27, %s443_s23 }
  0x42   : > { %p447_p12 = pneg %p446_p11  ;;  %p453_p2 = por %p452_p7, %p451_p6 }
  0x44   : > { %p454_p4 = pnand %p453_p2, %p447_p12 }
  0x46   : > { %457 = shalt.err (!%p454_p4)
}
  0x47   : > { %355 = dma.hbm_to_vmem [thread:$0]  (!%p622_p13), %s669_s7, 128, %s147_s14, %s136_s28  }
  0x48   : > { %p775_p10 = scmp.ne.s32.totalorder %s774_s29, 0 }
  0x49   : > { %s696_s5 = sand.u32 (!%p775_p10), 1, %s520_s10   ;;  %p776_p6 = scmp.ne.s32.totalorder (!%p775_p10), %s768_s20, 0 }
  0x4a   : > { %155 = sbr.rel (%p775_p10) target bundleno = 122 (0x7a), region = 28  ;;  %s699_s6 = sshll.u32 (!%p775_p10), %s696_s5, 3 }
  0x4b   : > { %s158_s8 = scalar_lea.sflag (!%p775_p10), [#allocation3], %s696_s5  ;;  %s161_s30 = scalar_lea.vmem (!%p775_p10), [#allocation2], %s699_s6 }
  0x51   : > { %503 = dma.done.wait (%p776_p6), %s158_s8, 128  }
  0x52   : > { %505 = vsyncadd (%p776_p6), %s158_s8, 4294967168  ;;  %s167_s3 = scalar_lea.sflag [#allocation6], %s696_s5  ;;  %s170_s29 = scalar_lea.vmem [#allocation5], %s699_s6 }
  0x53   : > { %507 = dma.done.wait (%p776_p6), %s167_s3, 128  }
  0x54   : > { %509 = vsyncadd (%p776_p6), %s167_s3, 4294967168  ;;  %v196_v0 = vld [vmem:[%s161_s30] sm:$0xff]  ;;  %v197_v1 = vld [vmem:[%s170_s29] sm:$0xff]  ;;  %s195_s20 = scalar_lea.vmem [#allocation7], %s699_s6  ;;  %s340_s14 = sshll.u32 %s569_s13, 7 }
  0x55   : > { %v198_v2 = vmul.f32 %v197_v1, %v196_v0  ;;  %v207_v3 = vsub.f32 1.0, %v196_v0  ;;  %v208_v4 = vsub.f32 1.0, %v197_v1  ;;  %s235_s7 = sshll.u32 %s195_s20, 4  ;;  %s720_s16 = scalar_lea.hbm %s764_s2, %s340_s14  ;;  %s715_s7 = int_to_ptr.vmem [resolvable:$true] %s235_s7 }
  0x56   : > { %s222_s24 = scalar_lea.sflag [#allocation4], %s696_s5  ;;  %s458_s17 = scalar_lea.vmem %s715_s7, 128 }
  0x57   : > { %v199_v5 = vadd.f32 1e-08, %v198_v2  ;;  %v209_v6 = vmul.f32 %v208_v4, %v207_v3  ;;  %p459_p13 = scmp.ne.s32.totalorder %s715_s7, %s458_s17  ;;  %p777_p3 = scmp.ne.s32.totalorder %s769_s21, 0 }
  0x58   : > { %s532_s13 = smov [#allocation7]  }
  0x59   : > { %394 = vrsqrt.f32 %v199_v5  ;;  %v210_v7 = vadd.f32 1e-08, %v209_v6  ;;  %vm202_vm0 = vcmp.eq.f32.partialorder %v199_v5, inf  ;;  %v205_v10 = vand.u32 2147483648, %v199_v5  ;;  %p460_p7 = pnand %p459_p13, %p777_p3  ;;  %s462_s19 = sshll.u32 %s532_s13, 4  ;;  %s463_s19 = int_to_ptr.vmem [resolvable:$false] %s462_s19 }
  0x5a   : > { %vm204_vm1 = vcmp.eq.f32.partialorder %v199_v5, 0.0  ;;  %s464_s23 = scalar_lea.vmem %s463_s19, 256  ;;  %p465_p8 = scmp.lt.s32.totalorder %s715_s7, %s463_s19 }
  0x5b   : > { %396 = vrsqrt.f32 %v210_v7  ;;  %vm213_vm2 = vcmp.eq.f32.partialorder %v210_v7, inf  ;;  %v216_v13 = vand.u32 2147483648, %v210_v7  ;;  %vm215_vm3 = vcmp.eq.f32.partialorder %v210_v7, 0.0  ;;  %p461_p5 = pneg %p460_p7  ;;  %p466_p9 = scmp.lt.s32.totalorder %s464_s23, %s458_s17 }
  0x5d   : > { %p467_p0 = por %p466_p9, %p465_p8 }
  0x5f   : > { %p468_p1 = pnand %p467_p0, %p461_p5 }
  0x63   : > { %v395_v8 = vpop.eup %394 }
  0x64   : > { %v201_v9 = vmul.f32 %v395_v8, %v199_v5 }
  0x65   : > { %v397_v11 = vpop.eup %396 }
  0x66   : > { %v203_v12 = vsel %vm202_vm0, %v199_v5, %v201_v9  ;;  %v212_v14 = vmul.f32 %v397_v11, %v210_v7 }
  0x67   : > { %v206_v15 = vsel %vm204_vm1, %v205_v10, %v203_v12 }
  0x68   : > { %v214_v16 = vsel %vm213_vm2, %v210_v7, %v212_v14 }
  0x69   : > { %v217_v17 = vsel %vm215_vm3, %v216_v13, %v214_v16 }
  0x6a   : > { %v218_v18 = vadd.f32 %v217_v17, %v206_v15 }
  0x6c   : > { %220 = vst [vmem:[%s195_s20] sm:$0xff] %v218_v18 }
  0x6d   : > { %471 = shalt.err (!%p468_p1)
}
  0x6e   : > { %s472_s25 = scalar_lea.hbm %s720_s16, 128  ;;  %s476_s5 = scalar_lea.hbm %s764_s2, 256 }
  0x6f   : > { %p473_p11 = scmp.ne.s32.totalorder %s720_s16, %s472_s25  ;;  %p477_p4 = scmp.lt.u32.totalorder %s720_s16, %s764_s2 }
  0x70   : > { %p478_p10 = scmp.lt.u32.totalorder %s476_s5, %s472_s25  ;;  %p480_p13 = scmp.lt.u32.totalorder %s472_s25, %s720_s16 }
  0x71   : > { %p474_p12 = pnand %p473_p11, %p777_p3 }
  0x72   : > { %p479_p6 = por %p478_p10, %p477_p4 }
  0x73   : > { %p475_p2 = pneg %p474_p12 }
  0x74   : > { %p481_p7 = por %p480_p13, %p479_p6 }
  0x76   : > { %p482_p5 = pnand %p481_p7, %p475_p2 }
  0x78   : > { %485 = shalt.err (!%p482_p5)
}
  0x79   : > { %347 = dma.vmem_to_hbm [thread:$0]  (%p777_p3), %s715_s7, 128, %s720_s16, %s222_s24  }
  0x7a PF: > { %s247_s30 = sand.u32 1, %s516_s9   ;;  %p778_p8 = scmp.ne.s32.totalorder %s770_s22, 0 }
  0x7b   : > { %p779_p9 = scmp.ge.s32.totalorder %s528_s12, 2  ;;  %s248_s3 = scalar_lea.sflag [#allocation4], %s247_s30 }
  0x7d   : > { %p357_p0 = pnand %p779_p9, %p778_p8 }
  0x7f   : > { %511 = dma.done.wait (!%p357_p0), %s248_s3, 128  }
  0x80   : > { %513 = vsyncadd (!%p357_p0), %s248_s3, 4294967168  ;;  %p18_p1 = scmp.ge.s32.totalorder %s573_s15, 4   ;;  %s780_s9 = smov %s520_s10 }
  0x81   : > { %s781_s10 = smov %s524_s11  ;;  %s782_s11 = smov %s585_s18 }
  0x82   : > { %s783_s12 = smov %s573_s15  ;;  %20 = sbr.rel (!%p18_p1) target bundleno = 7 (0x7), region = 86 }
  0x89   :  { %253 = vsyncpa [#allocation3], 1 }
  0x8a   :  { %255 = vsyncpa [#allocation3 + $0x1], 1 }
  0x8b   :  { %256 = vsyncpa [#allocation6], 1 }
  0x8c   :  { %258 = vsyncpa [#allocation6 + $0x1], 1 }
  0x8d   :  { %259 = vsyncpa [#allocation4], 1 }
  0x8e   :  { %261 = vsyncpa [#allocation4 + $0x1], 1 }

</bundles_post_ra>
